<compile_context>
chip_gen: v6e
topology: v6e:2x2x1
jax: 0.10.0
libtpu: 0.0.40
codegen_flags: <defaults>
</compile_context>

<pallas_src>
import jax
import jax.numpy as jnp
from jax.experimental import pallas as pl
from jax.experimental.pallas import tpu as pltpu

INPUT_DIM = 472
H1 = 128
H2 = 64
OUT = 2
OUT_STORE = 8   # narrow padded logit store; wrapper slices [:, :2]


def _round_up(a, m):
    return pl.cdiv(a, m) * m


def mlp_kernel(x_ref, w1_ref, b1_ref, w2_ref, b2_ref, w3_ref, b3_ref, o_ref):
    # x arrives straight from HBM as f32; cast to bf16 here (VPU work hidden
    # under the x DMA, which is the wall).
    x = x_ref[...].astype(jnp.bfloat16)                               # [TB, 472]
    # fc1 + ReLU (f32 accumulate on the MXU, f32 bias)
    h1 = jnp.dot(x, w1_ref[...], preferred_element_type=jnp.float32) + b1_ref[...]
    h1 = jnp.maximum(h1, 0.0).astype(jnp.bfloat16)                    # [TB, 128]
    # dropout1: eval-mode identity
    # fc2 + ReLU
    h2 = jnp.dot(h1, w2_ref[...], preferred_element_type=jnp.float32) + b2_ref[...]
    h2 = jnp.maximum(h2, 0.0).astype(jnp.bfloat16)                    # [TB, 64]
    # dropout2: eval-mode identity
    # fc3 logits (8 lanes stored; cols 2..7 carry zero weight/bias padding)
    o_ref[...] = jnp.dot(h2, w3_ref[...], preferred_element_type=jnp.float32) + b3_ref[...]


def prepare_params(params):
    """Cast weights to bf16 and pad the tiny fc3 params 2 -> OUT_STORE lanes."""
    w1, b1, w2, b2, w3, b3 = params
    w3p = jnp.zeros((H2, OUT_STORE), jnp.float32).at[:, :OUT].set(w3)
    b3p = jnp.zeros((1, OUT_STORE), jnp.float32).at[:, :OUT].set(b3)
    return (w1.astype(jnp.bfloat16), b1,
            w2.astype(jnp.bfloat16), b2,
            w3p.astype(jnp.bfloat16), b3p)


def simple_nn_forward(x, prepped_params, *, tb=4096):
    """x: [B, 472] float32 -> logits [B, 2] float32."""
    w1, b1, w2, b2, w3, b3 = prepped_params
    B = x.shape[0]

    # Batch tile: multiple of 8 sublanes, never larger than the (8-rounded)
    # batch, and capped so large batches always yield >= 2 grid tiles
    # (keeps both v7x TensorCores busy under "parallel" semantics).
    tb = max(8, min(_round_up(tb, 8),
                    _round_up(pl.cdiv(B, 2), 8),
                    _round_up(B, 8)))
    pB = _round_up(B, tb)
    grid = (pB // tb,)

    # Batch padding only for ragged B; feature dim is NOT padded or cast.
    if pB != B:
        x = jnp.pad(x, ((0, pB - B), (0, 0)))

    const = lambda i: (0, 0)  # weights/biases: same block every step (VMEM-resident)

    weight_bytes = (INPUT_DIM * H1 + H1 * H2 + H2 * OUT_STORE) * 2 \
                   + (H1 + H2 + OUT_STORE) * 4
    cost = pl.CostEstimate(
        flops=2 * pB * (INPUT_DIM * H1 + H1 * H2 + H2 * OUT_STORE),
        transcendentals=0,
        bytes_accessed=pB * INPUT_DIM * 4 + pB * OUT_STORE * 4 + weight_bytes,
    )

    out_padded = pl.pallas_call(
        mlp_kernel,
        out_shape=jax.ShapeDtypeStruct((pB, OUT_STORE), jnp.float32),
        grid=grid,
        in_specs=[
            pl.BlockSpec((tb, INPUT_DIM), lambda i: (i, 0)),   # x: streamed f32 batch tiles
            pl.BlockSpec((INPUT_DIM, H1), const),
            pl.BlockSpec((1, H1), const),
            pl.BlockSpec((H1, H2), const),
            pl.BlockSpec((1, H2), const),
            pl.BlockSpec((H2, OUT_STORE), const),
            pl.BlockSpec((1, OUT_STORE), const),
        ],
        out_specs=pl.BlockSpec((tb, OUT_STORE), lambda i: (i, 0)),
        compiler_params=pltpu.CompilerParams(
            dimension_semantics=("parallel",),               # megacore split on v7x
            vmem_limit_bytes=48 * 1024 * 1024,
        ),
        cost_estimate=cost,
    )(x, w1, b1, w2, b2, w3, b3)

    return out_padded[:B, :OUT]


def init_params(key):
    """Deterministic init mimicking PyTorch nn.Linear (uniform +/- 1/sqrt(fan_in)).

    Weights returned in (in, out) layout, f32 (reference precision).
    """
    def linear(key, fan_in, fan_out):
        kw, kb = jax.random.split(key)
        bound = 1.0 / jnp.sqrt(fan_in)
        w = jax.random.uniform(kw, (fan_in, fan_out), jnp.float32, -bound, bound)
        b = jax.random.uniform(kb, (1, fan_out), jnp.float32, -bound, bound)
        return w, b

    k1, k2, k3 = jax.random.split(key, 3)
    w1, b1 = linear(k1, INPUT_DIM, H1)
    w2, b2 = linear(k2, H1, H2)
    w3, b3 = linear(k3, H2, OUT)
    return (w1, b1, w2, b2, w3, b3)


def reference_forward(x, params):
    """Plain-JAX f32 reference (PyTorch eval-mode semantics)."""
    w1, b1, w2, b2, w3, b3 = params
    h1 = jnp.maximum(x @ w1 + b1, 0.0)
    h2 = jnp.maximum(h1 @ w2 + b2, 0.0)
    return h2 @ w3 + b3


if __name__ == "__main__":
    key = jax.random.PRNGKey(0)
    kx, kp = jax.random.split(key)

    B = 8
    x = jax.random.normal(kx, (B, INPUT_DIM), jnp.float32)
    params = init_params(kp)
    prepped = prepare_params(params)

    out = simple_nn_forward(x, prepped)
    out = jax.block_until_ready(out)

    ref = reference_forward(x, params)
    assert out.shape == (B, OUT), out.shape
    # bf16 operands vs f32 reference: loosened tolerance (documented tradeoff).
    assert jnp.allclose(out, ref, atol=3e-2, rtol=3e-2), (
        f"mismatch vs reference, max abs diff = {jnp.max(jnp.abs(out - ref))}")

    print("KERNEL_OK")
</pallas_src>

<mosaic_0001>
module attributes {stable_mosaic.version = 11 : i64} {
  func.func @mlp_kernel(%arg0: i32, %arg1: memref<8x472xf32, #tpu.memory_space<vmem>>, %arg2: memref<472x128xbf16, #tpu.memory_space<vmem>>, %arg3: memref<1x128xf32, #tpu.memory_space<vmem>>, %arg4: memref<128x64xbf16, #tpu.memory_space<vmem>>, %arg5: memref<1x64xf32, #tpu.memory_space<vmem>>, %arg6: memref<64x8xbf16, #tpu.memory_space<vmem>>, %arg7: memref<1x8xf32, #tpu.memory_space<vmem>>, %arg8: memref<8x8xf32, #tpu.memory_space<vmem>>) attributes {dimension_semantics = [#tpu.dimension_semantics<parallel>], iteration_bounds = array<i64: 1>, scalar_prefetch = 0 : i64, scratch_operands = 0 : i64, tpu.core_type = #tpu.core_type<tc>, window_params = [{transform_indices = @transform_0, window_bounds = array<i64: 8, 472>}, {pipeline_mode = #tpu.pipeline_mode<synchronous>, transform_indices = @transform_1, window_bounds = array<i64: 472, 128>}, {pipeline_mode = #tpu.pipeline_mode<synchronous>, transform_indices = @transform_2, window_bounds = array<i64: 1, 128>}, {pipeline_mode = #tpu.pipeline_mode<synchronous>, transform_indices = @transform_3, window_bounds = array<i64: 128, 64>}, {pipeline_mode = #tpu.pipeline_mode<synchronous>, transform_indices = @transform_4, window_bounds = array<i64: 1, 64>}, {pipeline_mode = #tpu.pipeline_mode<synchronous>, transform_indices = @transform_5, window_bounds = array<i64: 64, 8>}, {pipeline_mode = #tpu.pipeline_mode<synchronous>, transform_indices = @transform_6, window_bounds = array<i64: 1, 8>}, {transform_indices = @transform_7, window_bounds = array<i64: 8, 8>}]} {
    %c0 = arith.constant 0 : index
    %c0_0 = arith.constant 0 : index
    %0 = vector.load %arg1[%c0, %c0_0] : memref<8x472xf32, #tpu.memory_space<vmem>>, vector<8x472xf32>
    %1 = arith.truncf %0 : vector<8x472xf32> to vector<8x472xbf16>
    %c0_1 = arith.constant 0 : index
    %c0_2 = arith.constant 0 : index
    %2 = vector.load %arg2[%c0_1, %c0_2] : memref<472x128xbf16, #tpu.memory_space<vmem>>, vector<472x128xbf16>
    %cst = arith.constant dense<0.000000e+00> : vector<8x128xf32>
    %3 = tpu.matmul %1, %2, %cst {dimension_numbers = #tpu.dot_dimension_numbers<[1], [0], [0], [1], [0, 0, 1, 1], [], []>} : vector<8x472xbf16>, vector<472x128xbf16>, vector<8x128xf32> -> vector<8x128xf32>
    %c0_3 = arith.constant 0 : index
    %c0_4 = arith.constant 0 : index
    %4 = vector.load %arg3[%c0_3, %c0_4] : memref<1x128xf32, #tpu.memory_space<vmem>>, vector<1x128xf32>
    %5 = vector.broadcast %4 : vector<1x128xf32> to vector<8x128xf32>
    %6 = arith.addf %3, %5 : vector<8x128xf32>
    %cst_5 = arith.constant 0.000000e+00 : f32
    %7 = vector.broadcast %cst_5 : f32 to vector<8x128xf32>
    %8 = arith.maximumf %6, %7 : vector<8x128xf32>
    %9 = arith.truncf %8 : vector<8x128xf32> to vector<8x128xbf16>
    %c0_6 = arith.constant 0 : index
    %c0_7 = arith.constant 0 : index
    %10 = vector.load %arg4[%c0_6, %c0_7] : memref<128x64xbf16, #tpu.memory_space<vmem>>, vector<128x64xbf16>
    %cst_8 = arith.constant dense<0.000000e+00> : vector<8x64xf32>
    %11 = tpu.matmul %9, %10, %cst_8 {dimension_numbers = #tpu.dot_dimension_numbers<[1], [0], [0], [1], [0, 0, 1, 1], [], []>} : vector<8x128xbf16>, vector<128x64xbf16>, vector<8x64xf32> -> vector<8x64xf32>
    %c0_9 = arith.constant 0 : index
    %c0_10 = arith.constant 0 : index
    %12 = vector.load %arg5[%c0_9, %c0_10] : memref<1x64xf32, #tpu.memory_space<vmem>>, vector<1x64xf32>
    %13 = vector.broadcast %12 : vector<1x64xf32> to vector<8x64xf32>
    %14 = arith.addf %11, %13 : vector<8x64xf32>
    %cst_11 = arith.constant 0.000000e+00 : f32
    %15 = vector.broadcast %cst_11 : f32 to vector<8x64xf32>
    %16 = arith.maximumf %14, %15 : vector<8x64xf32>
    %17 = arith.truncf %16 : vector<8x64xf32> to vector<8x64xbf16>
    %c0_12 = arith.constant 0 : index
    %c0_13 = arith.constant 0 : index
    %18 = vector.load %arg6[%c0_12, %c0_13] : memref<64x8xbf16, #tpu.memory_space<vmem>>, vector<64x8xbf16>
    %cst_14 = arith.constant dense<0.000000e+00> : vector<8x8xf32>
    %19 = tpu.matmul %17, %18, %cst_14 {dimension_numbers = #tpu.dot_dimension_numbers<[1], [0], [0], [1], [0, 0, 1, 1], [], []>} : vector<8x64xbf16>, vector<64x8xbf16>, vector<8x8xf32> -> vector<8x8xf32>
    %c0_15 = arith.constant 0 : index
    %c0_16 = arith.constant 0 : index
    %20 = vector.load %arg7[%c0_15, %c0_16] : memref<1x8xf32, #tpu.memory_space<vmem>>, vector<1x8xf32>
    %21 = vector.broadcast %20 : vector<1x8xf32> to vector<8x8xf32>
    %22 = arith.addf %19, %21 : vector<8x8xf32>
    %c0_17 = arith.constant 0 : index
    %c0_18 = arith.constant 0 : index
    %23 = vector.load %arg8[%c0_17, %c0_18] : memref<8x8xf32, #tpu.memory_space<vmem>>, vector<8x8xf32>
    tpu.vector_store %arg8[%c0_17, %c0_18], %22 {strides = array<i32>} : memref<8x8xf32, #tpu.memory_space<vmem>>, vector<8x8xf32>,
    return
  }
  func.func @transform_0(%arg0: i32) -> (i32, i32) {
    %c0_i32 = arith.constant 0 : i32
    %c0_i32_0 = arith.constant 0 : i32
    return %arg0, %c0_i32 : i32, i32
  }
  func.func @transform_1(%arg0: i32) -> (i32, i32) {
    %c0_i32 = arith.constant 0 : i32
    %c0_i32_0 = arith.constant 0 : i32
    %c0_i32_1 = arith.constant 0 : i32
    return %c0_i32, %c0_i32_0 : i32, i32
  }
  func.func @transform_2(%arg0: i32) -> (i32, i32) {
    %c0_i32 = arith.constant 0 : i32
    %c0_i32_0 = arith.constant 0 : i32
    %c0_i32_1 = arith.constant 0 : i32
    return %c0_i32, %c0_i32_0 : i32, i32
  }
  func.func @transform_3(%arg0: i32) -> (i32, i32) {
    %c0_i32 = arith.constant 0 : i32
    %c0_i32_0 = arith.constant 0 : i32
    %c0_i32_1 = arith.constant 0 : i32
    return %c0_i32, %c0_i32_0 : i32, i32
  }
  func.func @transform_4(%arg0: i32) -> (i32, i32) {
    %c0_i32 = arith.constant 0 : i32
    %c0_i32_0 = arith.constant 0 : i32
    %c0_i32_1 = arith.constant 0 : i32
    return %c0_i32, %c0_i32_0 : i32, i32
  }
  func.func @transform_5(%arg0: i32) -> (i32, i32) {
    %c0_i32 = arith.constant 0 : i32
    %c0_i32_0 = arith.constant 0 : i32
    %c0_i32_1 = arith.constant 0 : i32
    return %c0_i32, %c0_i32_0 : i32, i32
  }
  func.func @transform_6(%arg0: i32) -> (i32, i32) {
    %c0_i32 = arith.constant 0 : i32
    %c0_i32_0 = arith.constant 0 : i32
    %c0_i32_1 = arith.constant 0 : i32
    return %c0_i32, %c0_i32_0 : i32, i32
  }
  func.func @transform_7(%arg0: i32) -> (i32, i32) {
    %c0_i32 = arith.constant 0 : i32
    %c0_i32_0 = arith.constant 0 : i32
    return %arg0, %c0_i32 : i32, i32
  }
}

</mosaic_0001>

<bundles_post_ra>
// kernel: tpu_custom_call.1
= control target key start
LH: loop header
LB: loop body
LE: loop exit
PB: predicated region body
PF: predicated region fallthrough
CT: control target
= control target key end

     0   :  { %12 = vsyncpa [#allocation3], 0  ;;  %s942_s0 = inlined_call_operand.vmem [shape: f32[8,472], index: 0, kind: input, shape index: {}]   ;;  %s943_s1 = inlined_call_operand.hbm [shape: bf16[472,128], index: 1, kind: input, shape index: {}]   ;;  %s944_s2 = inlined_call_operand.vmem [shape: f32[1,128], index: 2, kind: input, shape index: {}]   ;;  %s945_s3 = inlined_call_operand.vmem [shape: bf16[128,64], index: 3, kind: input, shape index: {}]   ;;  %s946_s4 = inlined_call_operand.vmem [shape: f32[1,64], index: 4, kind: input, shape index: {}]   ;;  %s947_s5 = inlined_call_operand.vmem [shape: bf16[64,8], index: 5, kind: input, shape index: {}]   ;;  %s948_s6 = inlined_call_operand.vmem [shape: f32[1,8], index: 6, kind: input, shape index: {}]   ;;  %s949_s7 = inlined_call_operand.hbm [shape: f32[8,8], index: 7, kind: output, shape index: {}]  }
   0x1   :  { %13 = vsyncpa [#allocation4], 0  ;;  %s804_s24 = smov [#allocation2]  }
   0x2   :  { %s21_s25 = sshll.u32 %s804_s24, 4  ;;  %s22_s25 = int_to_ptr.vmem [resolvable:$true] %s21_s25 }
   0x3   :  { %s768_s26 = scalar_lea.vmem %s22_s25, 3776  ;;  %p773_p1 = scmp.lt.s32.totalorder %s22_s25, %s22_s25 }
   0x4   :  { %p769_p0 = scmp.ne.s32.totalorder %s22_s25, %s768_s26  ;;  %p774_p2 = scmp.lt.s32.totalorder %s768_s26, %s768_s26 }
   0x6   :  { %p775_p3 = por %p774_p2, %p773_p1 }
   0x8   :  { %p776_p4 = pnand %p775_p3, %p769_p0 }
   0xa   :  { %779 = shalt.err (!%p776_p4)
}
   0xb   :  { %s805_s27 = smov 64   ;;  %s806_s28 = smov 4  }
   0xc   :  { %27 = dma.hbm_to_vmem [thread:$0]  %s943_s1, 3776, %s22_s25, [#allocation3], %s805_s27, %s805_s27, %s806_s28  }
   0xd   :  { %800 = dma.done.wait [#allocation3], 3776  }
   0xe   :  { %801 = vsyncadd [#allocation3], 4294963520  ;;  %v807_v0 = vmov 0   ;;  %v718_v1 = vld [vmem:[#allocation2 + $0xb8] sm:$0xff]   ;;  %v719_v2 = vld [vmem:[#allocation2 + $0xb0] sm:$0xff]   ;;  %vm297_vm0 = vcmask 1043456  }
   0xf   :  { %341 = vmatprep.subr.bf16.mxu1 %v807_v0  ;;  %v721_v3 = vld [vmem:[#allocation2 + $0x78] sm:$0xff]   ;;  %v720_v5 = vld [vmem:[#allocation2 + $0xa8] sm:$0xff]   ;;  %v724_v6 = vld [vmem:[#allocation2 + $0x70] sm:$0xff]   ;;  %vm293_vm1 = vcmask 719872   ;;  %v808_v35 = vmov 0.0   ;;  %vm809_vm2 = vmmov 0  }
  0x10   :  { %342 = vmatpush1.bf16.msra.mxu1 %v718_v1  ;;  %v722_v4 = vld [vmem:[#allocation2 + $0x38] sm:$0xff]   ;;  %643 = vmatprep.subr.bf16.mxu0 %v721_v3  ;;  %v725_v7 = vld [vmem:[#allocation2 + $0x30] sm:$0xff]   ;;  %v723_v8 = vld [vmem:[#allocation2 + $0xa0] sm:$0xff]   ;;  %vm535_vm3 = vcmask 523264   ;;  %s810_s18 = smov [#allocation5]   ;;  %vm579_vm4 = vcmask 64512  }
  0x11   :  { %343 = vmatprep.subr.bf16.mxu1 %v807_v0  ;;  %644 = vmatpush3.bf16.msra.mxu0 %v722_v4  ;;  %v727_v9 = vld [vmem:[#allocation2 + $0x68] sm:$0xff]   ;;  %v730_v11 = vld [vmem:[#allocation2 + $0x60] sm:$0xff]   ;;  %v726_v12 = vld [vmem:[#allocation2 + $0x98] sm:$0xff]  }
  0x12   :  { %645 = vmatprep.subr.bf16.mxu0 %v724_v6  ;;  %v728_v10 = vld [vmem:[#allocation2 + $0x28] sm:$0xff]   ;;  %v731_v13 = vld [vmem:[#allocation2 + $0x20] sm:$0xff]   ;;  %v733_v14 = vld [vmem:[#allocation2 + $0x58] sm:$0xff]  }
  0x13   :  { %v729_v15 = vld [vmem:[#allocation2 + $0x90] sm:$0xff]   ;;  %v734_v16 = vld [vmem:[#allocation2 + $0x18] sm:$0xff]   ;;  %v732_v18 = vld [vmem:[#allocation2 + $0x88] sm:$0xff]  }
  0x14   :  { %344 = vmatpush1.bf16.msra.mxu1 %v719_v2  ;;  %v736_v17 = vld [vmem:[#allocation2 + $0x50] sm:$0xff]   ;;  %v739_v20 = vld [vmem:[#allocation2 + $0x48] sm:$0xff]   ;;  %v735_v21 = vld [vmem:[#allocation2 + $0x80] sm:$0xff]  }
  0x15   :  { %345 = vmatprep.subr.bf16.mxu1 %v807_v0  ;;  %646 = vmatpush3.bf16.msra.mxu0 %v725_v7  ;;  %v737_v19 = vld [vmem:[#allocation2 + $0x10] sm:$0xff]   ;;  %v738_v22 = vld [vmem:[#allocation2 + $0xe8] ss:$0 sps:$4 sm:$0xff]   ;;  %v742_v25 = vld [vmem:[#allocation2 + $0x40] sm:$0xff]  }
  0x16   :  { %647 = vmatprep.subr.bf16.mxu0 %v727_v9  ;;  %v740_v23 = vld [vmem:[#allocation2 + $0x8] sm:$0xff]   ;;  %v743_v27 = vld [vmem:[#allocation2] sm:$0xff]   ;;  %v45_v29 = vld [vmem:[%s942_s0 + $0x18] sm:$0xff]  ;;  %v299_v30 = vsel %vm297_vm0, %v738_v22, 0 }
  0x17   :  { %v43_v24 = vld [vmem:[%s942_s0 + $0x8] sm:$0xff]  ;;  %v42_v28 = vld [vmem:[%s942_s0] sm:$0xff]  ;;  %v49_v31 = vpack.c.bf16 %v45_v29, %v45_v29  ;;  %v748_v34 = vld [vmem:[%s945_s3 + $0x38] sm:$0xff]  }
  0x18   :  { %346 = vmatpush1.bf16.msra.mxu1 %v720_v5  ;;  %v47_v26 = vpack.c.bf16 %v43_v24, %v43_v24  ;;  %v741_v32 = vld [vmem:[#allocation2 + $0xe0] sm:$0xff]   ;;  %v46_v33 = vpack.c.bf16 %v42_v28, %v42_v28  ;;  %v744_v36 = vld [vmem:[#allocation2 + $0xd8] sm:$0xff]   ;;  %v749_v37 = vld [vmem:[%s945_s3 + $0x30] sm:$0xff]  }
  0x19   :  { %347 = vmatprep.subr.bf16.mxu1 %v807_v0  ;;  %648 = vmatpush3.bf16.msra.mxu0 %v728_v10  ;;  %v745_v38 = vld [vmem:[#allocation2 + $0xd0] sm:$0xff]   ;;  %v750_v39 = vld [vmem:[%s945_s3 + $0x28] sm:$0xff]   ;;  %v747_v41 = vld [vmem:[#allocation2 + $0xc0] sm:$0xff]  }
  0x1a   :  { %649 = vmatprep.subr.bf16.mxu0 %v730_v11  ;;  %333 = vmatprep.mubr.bf16.mxu0 %v47_v26  ;;  %v746_v40 = vld [vmem:[#allocation2 + $0xc8] sm:$0xff]   ;;  %v44_v42 = vld [vmem:[%s942_s0 + $0x10] sm:$0xff]  ;;  %v751_v44 = vld [vmem:[%s945_s3 + $0x20] sm:$0xff]  }
  0x1b   :  { %627 = vmatprep.mubr.msk.bf16.mxu1 %vm293_vm1, %v49_v31  ;;  %v48_v43 = vpack.c.bf16 %v44_v42, %v44_v42  ;;  %v752_v45 = vld [vmem:[%s945_s3 + $0x18] sm:$0xff]   ;;  %v753_v46 = vld [vmem:[%s945_s3 + $0x10] sm:$0xff]   ;;  %v754_v47 = vld [vmem:[%s945_s3 + $0x8] sm:$0xff]  }
  0x1c   :  { %348 = vmatpush1.bf16.msra.mxu1 %v723_v8  ;;  %v755_v48 = vld [vmem:[%s945_s3] sm:$0xff]   ;;  %v756_v49 = vld [vmem:[%s947_s5 + $0x18] sm:$0xff]   ;;  %v757_v50 = vld [vmem:[%s947_s5 + $0x10] sm:$0xff]  }
  0x1d   :  { %349 = vmatprep.subr.bf16.mxu1 %v807_v0  ;;  %650 = vmatpush3.bf16.msra.mxu0 %v731_v13  ;;  %v596_v56 = vld [vmem:[%s944_s2] ss:$0 sm:$0xff]  ;;  %v758_v1 = vld [vmem:[%s947_s5 + $0x8] sm:$0xff]  }
  0x1e   :  { %651 = vmatprep.subr.bf16.mxu0 %v733_v14  ;;  %v759_v2 = vld [vmem:[%s947_s5] sm:$0xff]   ;;  %s587_s5 = sshll.u32 %s810_s18, 4  ;;  %s588_s5 = int_to_ptr.vmem [resolvable:$true] %s587_s5 }
  0x1f   :  { %v628_v3 = vld [vmem:[%s946_s4] ss:$0 sm:$0xff]  ;;  %s780_s4 = scalar_lea.vmem %s588_s5, 128  ;;  %p785_p6 = scmp.lt.s32.totalorder %s588_s5, %s588_s5 }
  0x20   :  { %350 = vmatpush1.bf16.msra.mxu1 %v726_v12  ;;  %v637_v11 = vld [vmem:[%s948_s6] ss:$0 sm:$0xff]  ;;  %p781_p5 = scmp.ne.s32.totalorder %s588_s5, %s780_s4  ;;  %p786_p7 = scmp.lt.s32.totalorder %s780_s4, %s780_s4 }
  0x21   :  { %351 = vmatprep.subr.bf16.mxu1 %v807_v0  ;;  %652 = vmatpush3.bf16.msra.mxu0 %v734_v16 }
  0x22   :  { %653 = vmatprep.subr.bf16.mxu0 %v736_v17  ;;  %p787_p8 = por %p786_p7, %p785_p6 }
  0x24   :  { %352 = vmatpush1.bf16.msra.mxu1 %v729_v15  ;;  %p788_p9 = pnand %p787_p8, %p781_p5 }
  0x25   :  { %353 = vmatprep.subr.bf16.mxu1 %v807_v0  ;;  %654 = vmatpush3.bf16.msra.mxu0 %v737_v19 }
  0x26   :  { %655 = vmatprep.subr.bf16.mxu0 %v739_v20 }
  0x28   :  { %354 = vmatpush1.bf16.msra.mxu1 %v732_v18 }
  0x29   :  { %355 = vmatprep.subr.bf16.mxu1 %v807_v0  ;;  %656 = vmatpush3.bf16.msra.mxu0 %v740_v23 }
  0x2a   :  { %657 = vmatprep.subr.bf16.mxu0 %v742_v25 }
  0x2c   :  { %356 = vmatpush1.bf16.msra.mxu1 %v735_v21 }
  0x2d   :  { %361 = vmatprep.subr.bf16.mxu1 %v807_v0  ;;  %658 = vmatpush3.bf16.msra.mxu0 %v743_v27 }
  0x2e   :  { %679 = vmatprep.subr.bf16.mxu0 %v808_v35 }
  0x30   :  { %362 = vmatpush2.bf16.msra.mxu1 %v299_v30  ;;  %334 = vmatmul.mubr.bf16.vlgmr.msra.gmra.mxu0 %v46_v33 }
  0x31   :  { %363 = vmatprep.subr.bf16.mxu1 %v807_v0  ;;  %680 = vmatpush3.bf16.msra.mxu0 %v748_v34 }
  0x32   :  { %681 = vmatprep.subr.bf16.mxu0 %v808_v35  ;;  %695 = vmatprep.mubr.msk.bf16.mxu0 %vm809_vm2, %v808_v35 }
  0x34   :  { %364 = vmatpush2.bf16.msra.mxu1 %v741_v32 }
  0x35   :  { %365 = vmatprep.subr.bf16.mxu1 %v807_v0  ;;  %682 = vmatpush3.bf16.msra.mxu0 %v749_v37 }
  0x36   :  { %683 = vmatprep.subr.bf16.mxu0 %v808_v35 }
  0x38   :  { %366 = vmatpush2.bf16.msra.mxu1 %v744_v36 }
  0x39   :  { %367 = vmatprep.subr.bf16.mxu1 %v807_v0  ;;  %684 = vmatpush3.bf16.msra.mxu0 %v750_v39 }
  0x3a   :  { %685 = vmatprep.subr.bf16.mxu0 %v808_v35 }
  0x3c   :  { %368 = vmatpush2.bf16.msra.mxu1 %v745_v38 }
  0x3d   :  { %369 = vmatprep.subr.bf16.mxu1 %v807_v0  ;;  %686 = vmatpush3.bf16.msra.mxu0 %v751_v44 }
  0x3e   :  { %687 = vmatprep.subr.bf16.mxu0 %v808_v35 }
  0x40   :  { %370 = vmatpush2.bf16.msra.mxu1 %v746_v40 }
  0x41   :  { %371 = vmatprep.subr.bf16.mxu1 %v807_v0  ;;  %688 = vmatpush3.bf16.msra.mxu0 %v752_v45 }
  0x42   :  { %689 = vmatprep.subr.bf16.mxu0 %v808_v35 }
  0x44   :  { %372 = vmatpush2.bf16.msra.mxu1 %v747_v41 }
  0x45   :  { %699 = vmatprep.subr.bf16.mxu1 %v808_v35  ;;  %690 = vmatpush3.bf16.msra.mxu0 %v753_v46 }
  0x46   :  { %691 = vmatprep.subr.bf16.mxu0 %v808_v35 }
  0x47   :  { %374 = vmatmul.mubr.bf16.vlgmr.msra.gmra.mxu1 %v48_v43 }
  0x48   :  { %707 = vmatprep.mubr.msk.bf16.mxu1 %vm809_vm2, %v808_v35  ;;  %700 = vmatpush3.bf16.msra.mxu1 %v756_v49 }
  0x49   :  { %692 = vmatpush3.bf16.msra.mxu0 %v754_v47  ;;  %701 = vmatprep.subr.bf16.mxu1 %v808_v35 }
  0x4a   :  { %693 = vmatprep.subr.bf16.mxu0 %v808_v35 }
  0x4c   :  { %702 = vmatpush3.bf16.msra.mxu1 %v757_v50 }
  0x4d   :  { %694 = vmatpush3.bf16.msra.mxu0 %v755_v48  ;;  %703 = vmatprep.subr.bf16.mxu1 %v808_v35 }
  0x50   :  { %704 = vmatpush3.bf16.msra.mxu1 %v758_v1 }
  0x51   :  { %705 = vmatprep.subr.bf16.mxu1 %v808_v35 }
  0x54   :  { %706 = vmatpush3.bf16.msra.mxu1 %v759_v2 }
  0xf0   :  { %v659_v51 = vpop.f32.mrf.mxu0 }
  0xf2   :  { %v660_v52 = vpop.f32.mrf.mxu0 }
  0xf3   :  { %v661_v55 = vadd.f32 %v660_v52, %v659_v51 }
  0xf4   :  { %v662_v53 = vpop.f32.mrf.mxu0 }
  0xf5   :  { %v336_v57 = vadd.f32 %v661_v55, %v596_v56 }
  0xf6   :  { %v663_v54 = vpop.f32.mrf.mxu0 }
 0x107   :  { %v375_v58 = vpop.f32.mrf.mxu1 }
 0x108   :  { %v376_v59 = vadd.f32 %v375_v58, %v336_v57 }
 0x109   :  { %v377_v60 = vpop.f32.mrf.mxu1 }
 0x10a   :  { %v381_v61 = vmax.f32 %v376_v59, 0.0 }
 0x10b   :  { %v378_v62 = vpop.f32.mrf.mxu1 }
 0x10c   :  { %v382_v63 = vpack.c.bf16 %v381_v61, %v381_v61 }
 0x10d   :  { %v379_v0 = vpop.f32.mrf.mxu1 }
 0x10e   :  { %696 = vmatmul.mubr.bf16.vlgmr.msra.gmra.mxu0 %v382_v63 }
 0x1ce   :  { %v488_v4 = vpop.f32.mrf.mxu0 }
 0x1cf   :  { %v489_v5 = vadd.f32 %v628_v3, %v488_v4 }
 0x1d0   :  { %v697_v6 = vpop.f32.mrf.mxu0 }
 0x1d1   :  { %v494_v7 = vmax.f32 %v489_v5, 0.0 }
 0x1d2   :  { %v491_v8 = vpop.f32.mrf.mxu0 }
 0x1d3   :  { %v495_v9 = vpack.c.bf16 %v494_v7, %v494_v7 }
 0x1d4   :  { %v698_v10 = vpop.f32.mrf.mxu0 }
 0x1d5   :  { %708 = vmatmul.mubr.msk.bf16.vlgmr.msra.gmra.mxu1 %vm535_vm3, %v495_v9 }
 0x295   :  { %v573_v12 = vpop.f32.mrf.mxu1 }
 0x296   :  { %v574_v13 = vadd.f32 %v637_v11, %v573_v12 }
 0x297   :  { %v709_v14 = vpop.f32.mrf.mxu1 }
 0x298   :  { %580 = vst.msk [vmem:[#allocation5] sm:$0xff] %vm579_vm4, %v574_v13 }
 0x299   :  { %v576_v15 = vpop.f32.mrf.mxu1 }
 0x29a   :  { %791 = shalt.err (!%p788_p9)
}
 0x29b   :  { %590 = dma.vmem_to_hbm [thread:$0]  %s588_s5, 128, %s949_s7, [#allocation4]   ;;  %v710_v16 = vpop.f32.mrf.mxu1 }
 0x29c   :  { %802 = dma.done.wait [#allocation4], 128  }
 0x29d   :  { %803 = vsyncadd [#allocation4], 4294967168 }
 0x29e   :  { %594 = vsyncpa [#allocation3], 1 }
 0x29f   :  { %595 = vsyncpa [#allocation4], 1 }

</bundles_post_ra>
